<compile_context>
chip_gen: v5e
topology: v5e:2x2
jax: 0.10.0
libtpu: 0.0.40
codegen_flags: <defaults>
</compile_context>

<pallas_src>
import functools
import math

import jax
import jax.numpy as jnp
from jax import lax
from jax.experimental import pallas as pl
from jax.experimental.pallas import tpu as pltpu


def _round_up(x: int, m: int) -> int:
    return (x + m - 1) // m * m


# ----------------------------- kernel bodies ---------------------------------


def _epilogue(y_f32, res_ref, p_ref, o_ref, *, eps: float, n_real: int):
    """bias add -> dropout(eval, identity) -> residual add -> LayerNorm -> store."""
    params = p_ref[...]                        # (3, n_pad) f32: [bias, gamma, beta]
    bias = params[0:1, :]
    gamma = params[1:2, :]
    beta = params[2:3, :]

    x = y_f32 + bias + res_ref[...].astype(jnp.float32)

    n_pad = x.shape[-1]
    inv_n = 1.0 / float(n_real)
    # Padded feature columns are exact zeros (weight, bias and residual are all
    # zero-padded), so the unmasked sum already equals the sum over real features.
    mean = jnp.sum(x, axis=-1, keepdims=True) * inv_n
    centered = x - mean
    sumsq = jnp.sum(centered * centered, axis=-1, keepdims=True)
    if n_pad != n_real:
        # Each padded column contributes (0 - mean)^2 = mean^2; remove analytically
        # (no iota / where masking, keeps the numerically stable centered form).
        sumsq = sumsq - float(n_pad - n_real) * (mean * mean)
    var = sumsq * inv_n
    xn = centered * lax.rsqrt(var + eps)
    o_ref[...] = (xn * gamma + beta).astype(o_ref.dtype)


def _mxu_dot(a, b, precise: bool):
    if precise:
        return jnp.dot(a, b, preferred_element_type=jnp.float32,
                       precision=lax.Precision.HIGHEST)
    return jnp.dot(a, b, preferred_element_type=jnp.float32)


def _kernel_resident(h_ref, res_ref, w_ref, p_ref, o_ref, *,
                     eps: float, n_real: int, precise: bool):
    # Whole (padded) contraction fits one block: single MXU matmul, no accumulator
    # scratch, epilogue runs directly on the dot result.
    y = _mxu_dot(h_ref[...], w_ref[...], precise)
    _epilogue(y, res_ref, p_ref, o_ref, eps=eps, n_real=n_real)


def _kernel_stream_k(h_ref, res_ref, w_ref, p_ref, o_ref, acc_ref, *,
                     eps: float, n_real: int, precise: bool):
    k = pl.program_id(1)

    @pl.when(k == 0)
    def _():
        acc_ref[...] = jnp.zeros_like(acc_ref)

    acc_ref[...] += _mxu_dot(h_ref[...], w_ref[...], precise)

    @pl.when(k == pl.num_programs(1) - 1)
    def _():
        _epilogue(acc_ref[...], res_ref, p_ref, o_ref, eps=eps, n_real=n_real)


# ------------------------------- wrapper --------------------------------------


def self_output(hidden_states, input_tensor, weight, bias, gamma, beta, *,
                eps: float = 1e-5, dropout_prob: float = 0.0,
                block_rows: int = 512, block_k: int = 512,
                mxu_dtype="auto", force_stream_k: bool = False):
    """Fused Linear(+bias) -> dropout(eval) -> residual add -> LayerNorm.

    hidden_states : (M, input_size)
    input_tensor  : (M, output_size)
    weight        : (input_size, output_size)   (transposed vs torch's (out, in))
    bias, gamma, beta : (output_size,)
    mxu_dtype     : "auto" (default: bf16 feed for f32 inputs), an explicit dtype,
                    or None (keep input dtype).  f32 feed uses Precision.HIGHEST.
    force_stream_k: force the K-streaming accumulator path (mostly for testing).
    """
    if dropout_prob != 0.0:
        # TODO(synk): training-mode stochastic dropout (pltpu.prng_random_bits mask).
        raise NotImplementedError("only eval-mode (identity) dropout is implemented")

    M, K = hidden_states.shape
    N = weight.shape[1]
    assert weight.shape[0] == K
    assert input_tensor.shape == (M, N)
    out_dtype = hidden_states.dtype

    # ---- MXU feed dtype: bf16 by default for f32 inputs ----
    if isinstance(mxu_dtype, str) and mxu_dtype == "auto":
        op_dtype = jnp.bfloat16 if hidden_states.dtype == jnp.float32 else hidden_states.dtype
    elif mxu_dtype is None:
        op_dtype = hidden_states.dtype
    else:
        op_dtype = jnp.dtype(mxu_dtype)
    precise = jnp.dtype(op_dtype) == jnp.dtype(jnp.float32)

    h_item = jnp.dtype(op_dtype).itemsize
    w_item = jnp.dtype(op_dtype).itemsize
    res_item = jnp.dtype(input_tensor.dtype).itemsize
    out_item = jnp.dtype(out_dtype).itemsize

    # ---- physical VMEM budget (v7x: 64 MiB/TC, v5e/v6e: 128 MiB) ----
    try:
        vmem_cap = int(getattr(pltpu.get_tpu_info(), "vmem_capacity_bytes", 64 << 20))
    except Exception:
        vmem_cap = 64 << 20          # conservative (v7x) default
    budget = vmem_cap - (16 << 20)   # headroom for semaphores / internal scratch

    # ---- padded shapes (lane-dense, sublane-aligned) ----
    row_align = 16                                   # sublane-safe for f32 and bf16 tiles
    n128 = _round_up(N, 128)
    n256 = _round_up(N, 256)
    # Full-width MXU passes on v6e/v7x, but only if the extra padding is cheap (<=1/8).
    n_pad = n256 if (n256 - n128) * 8 <= n128 else n128
    k_pad0 = _round_up(K, 128)
    m16 = _round_up(M, row_align)

    params_bytes = 2 * 8 * n_pad * 4                 # (3,n_pad) sublane-padded, x2 buffers

    def _row_bytes(tm, tk, with_acc):
        return (2 * tm * tk * h_item + 2 * tm * n_pad * res_item
                + 2 * tm * n_pad * out_item + (tm * n_pad * 4 if with_acc else 0))

    # ---- weight residency decision (budget 2x for the non-Buffered(1) fallback) ----
    resident = (not force_stream_k) and (
        2 * k_pad0 * n_pad * w_item + params_bytes
        + _row_bytes(row_align, k_pad0, False) <= budget)

    if resident:
        tk = k_pad = k_pad0
        num_k = 1
        avail = budget - 2 * k_pad * n_pad * w_item - params_bytes
        per_row = 2 * tk * h_item + 2 * n_pad * res_item + 2 * n_pad * out_item
        tm_fit = max(int(avail // per_row), row_align)
        tm_cap = min(_round_up(block_rows, row_align), m16,
                     max(row_align, (tm_fit // row_align) * row_align))
        nt = -(-m16 // tm_cap)
        # v7x has 2 TensorCores: give the "parallel" row axis >= 2 steps when there are
        # enough rows (weight is resident, so the extra tile costs nothing).
        if nt == 1 and m16 >= 2 * row_align:
            nt = 2
        tm = _round_up(-(-m16 // nt), row_align)
    else:
        # Stream K into an f32 accumulator; large row tiles amortize the weight restream.
        tk = min(_round_up(block_k, 128), k_pad0)
        while True:
            avail = budget - 2 * tk * n_pad * w_item - params_bytes
            per_row = (2 * tk * h_item + 2 * n_pad * res_item
                       + 2 * n_pad * out_item + n_pad * 4)
            tm_fit = int(avail // per_row) if avail > 0 else 0
            if tm_fit >= 64 or tk <= 128:
                break
            tk = max(128, tk // 2)
        tm_cap = min(_round_up(block_rows, row_align), m16,
                     max(row_align, (tm_fit // row_align) * row_align))
        nt = -(-m16 // tm_cap)
        tm = _round_up(-(-m16 // nt), row_align)
        num_k = -(-k_pad0 // tk)
        k_pad = num_k * tk

    m_pad = nt * tm

    # ---- pad / cast inputs once, and only when actually needed ----
    def _prep2d(a, rows, cols, dtype):
        if dtype is not None and a.dtype != jnp.dtype(dtype):
            a = a.astype(dtype)                      # cast first (cheaper pad afterwards)
        pr, pc = rows - a.shape[0], cols - a.shape[1]
        if pr or pc:
            a = jnp.pad(a, ((0, pr), (0, pc)))
        return a

    def _prep1d(a, cols):
        a = a.astype(jnp.float32)
        if cols - a.shape[0]:
            a = jnp.pad(a, (0, cols - a.shape[0]))
        return a

    h = _prep2d(hidden_states, m_pad, k_pad, op_dtype)
    res = _prep2d(input_tensor, m_pad, n_pad, None)
    w = _prep2d(weight, k_pad, n_pad, op_dtype)
    params = jnp.stack([_prep1d(bias, n_pad), _prep1d(gamma, n_pad), _prep1d(beta, n_pad)])

    cost = pl.CostEstimate(
        flops=2 * m_pad * k_pad * n_pad,
        transcendentals=0,
        bytes_accessed=(m_pad * k_pad * h_item + k_pad * n_pad * w_item
                        + m_pad * n_pad * res_item + 3 * n_pad * 4
                        + m_pad * n_pad * out_item),
    )

    vmem_est = 2 * tk * n_pad * w_item + params_bytes + _row_bytes(tm, tk, not resident)
    vmem_limit = int(min(vmem_cap - (8 << 20), max(32 << 20, vmem_est * 3 // 2)))

    def _build(single_buffer: bool):
        # Grid-constant blocks (resident weight, packed bias/gamma/beta) don't need
        # double buffering; Buffered(1) halves their VMEM footprint where supported.
        const_mode = pl.Buffered(1) if single_buffer else None
        if resident:
            grid = (m_pad // tm,)
            in_specs = [
                pl.BlockSpec((tm, tk), lambda i: (i, 0)),                # activations
                pl.BlockSpec((tm, n_pad), lambda i: (i, 0)),             # residual
                pl.BlockSpec((tk, n_pad), lambda i: (0, 0),
                             pipeline_mode=const_mode),                  # resident weight
                pl.BlockSpec((3, n_pad), lambda i: (0, 0),
                             pipeline_mode=const_mode),                  # bias/gamma/beta
            ]
            out_specs = pl.BlockSpec((tm, n_pad), lambda i: (i, 0))
            scratch = []
            kernel = functools.partial(_kernel_resident, eps=eps, n_real=N,
                                       precise=precise)
            semantics = ("parallel",)
        else:
            grid = (m_pad // tm, num_k)
            in_specs = [
                pl.BlockSpec((tm, tk), lambda i, k: (i, k)),             # activations
                pl.BlockSpec((tm, n_pad), lambda i, k: (i, 0)),          # residual
                pl.BlockSpec((tk, n_pad), lambda i, k: (k, 0)),          # streamed weight
                pl.BlockSpec((3, n_pad), lambda i, k: (0, 0),
                             pipeline_mode=const_mode),                  # bias/gamma/beta
            ]
            out_specs = pl.BlockSpec((tm, n_pad), lambda i, k: (i, 0))
            scratch = [pltpu.VMEM((tm, n_pad), jnp.float32)]
            kernel = functools.partial(_kernel_stream_k, eps=eps, n_real=N,
                                       precise=precise)
            semantics = ("parallel", "arbitrary")

        return pl.pallas_call(
            kernel,
            out_shape=jax.ShapeDtypeStruct((m_pad, n_pad), out_dtype),
            grid_spec=pltpu.PrefetchScalarGridSpec(
                num_scalar_prefetch=0,
                grid=grid,
                in_specs=in_specs,
                out_specs=out_specs,
                scratch_shapes=scratch,
            ),
            compiler_params=pltpu.CompilerParams(
                dimension_semantics=semantics,
                vmem_limit_bytes=vmem_limit),
            cost_estimate=cost,
        )

    try:
        out = _build(single_buffer=True)(h, res, w, params)
    except Exception:
        # Older/newer jax may reject pipeline_mode=pl.Buffered(1); fall back to the
        # default double-buffered specs (VMEM budget above already covers this case).
        out = _build(single_buffer=False)(h, res, w, params)

    return out[:M, :N]


# ------------------------------ reference -------------------------------------


def reference(hidden_states, input_tensor, weight, bias, gamma, beta, eps=1e-5):
    y = jnp.dot(hidden_states.astype(jnp.float32), weight.astype(jnp.float32),
                precision=lax.Precision.HIGHEST) + bias.astype(jnp.float32)
    x = y + input_tensor.astype(jnp.float32)
    mean = jnp.mean(x, axis=-1, keepdims=True)
    var = jnp.mean((x - mean) ** 2, axis=-1, keepdims=True)
    xn = (x - mean) / jnp.sqrt(var + eps)
    return xn * gamma + beta


if __name__ == "__main__":
    # Shapes consistent with the module: batch=2, seq=8, hidden=32
    batch, seq = 2, 8
    input_size, output_size = 32, 32
    M = batch * seq

    key = jax.random.PRNGKey(0)
    k_h, k_res, k_w, k_b, k_h2, k_res2, k_w2, k_b2 = jax.random.split(key, 8)

    hidden_states = jax.random.normal(k_h, (M, input_size), dtype=jnp.float32)
    input_tensor = jax.random.normal(k_res, (M, output_size), dtype=jnp.float32)

    # nn.Linear default init: U(-1/sqrt(in), 1/sqrt(in)); LayerNorm: gamma=1, beta=0
    bound = 1.0 / math.sqrt(input_size)
    weight = jax.random.uniform(k_w, (input_size, output_size),
                                minval=-bound, maxval=bound, dtype=jnp.float32)
    bias = jax.random.uniform(k_b, (output_size,),
                              minval=-bound, maxval=bound, dtype=jnp.float32)
    gamma = jnp.ones((output_size,), dtype=jnp.float32)
    beta = jnp.zeros((output_size,), dtype=jnp.float32)

    ref = reference(hidden_states, input_tensor, weight, bias, gamma, beta)

    # 1) Default path: bf16 MXU feed, f32 accumulation + f32 LayerNorm math.
    out = jax.block_until_ready(
        self_output(hidden_states, input_tensor, weight, bias, gamma, beta))
    assert out.shape == (M, output_size)
    assert jnp.allclose(out, ref, atol=5e-2, rtol=5e-2), "bf16-feed mismatch vs reference"

    # 2) Explicit true-f32 path (precision=HIGHEST on the MXU) -- tight tolerance.
    out_f32 = jax.block_until_ready(
        self_output(hidden_states, input_tensor, weight, bias, gamma, beta,
                    mxu_dtype=jnp.float32))
    assert jnp.allclose(out_f32, ref, atol=3e-5, rtol=3e-5), "f32 mismatch vs reference"

    # 3) Ragged row count exercises the padded-rows path.
    out_ragged = jax.block_until_ready(
        self_output(hidden_states[:10], input_tensor[:10], weight, bias, gamma, beta))
    assert jnp.allclose(out_ragged, ref[:10], atol=5e-2, rtol=5e-2), "ragged mismatch"

    # 4) Forced K-streaming accumulator path (num_k > 1) at a slightly larger shape.
    M2, K2, N2 = 64, 256, 128
    h2 = jax.random.normal(k_h2, (M2, K2), dtype=jnp.float32)
    r2 = jax.random.normal(k_res2, (M2, N2), dtype=jnp.float32)
    bound2 = 1.0 / math.sqrt(K2)
    w2 = jax.random.uniform(k_w2, (K2, N2), minval=-bound2, maxval=bound2,
                            dtype=jnp.float32)
    b2 = jax.random.uniform(k_b2, (N2,), minval=-bound2, maxval=bound2,
                            dtype=jnp.float32)
    g2 = jnp.ones((N2,), dtype=jnp.float32)
    be2 = jnp.zeros((N2,), dtype=jnp.float32)
    ref2 = reference(h2, r2, w2, b2, g2, be2)
    out2 = jax.block_until_ready(
        self_output(h2, r2, w2, b2, g2, be2, block_k=128, force_stream_k=True))
    assert out2.shape == (M2, N2)
    assert jnp.allclose(out2, ref2, atol=1e-1, rtol=1e-1), "stream-K mismatch vs reference"

    print("KERNEL_OK")
</pallas_src>

<mosaic_0001>
module attributes {stable_mosaic.version = 11 : i64} {
  func.func @_kernel_resident(%arg0: i32, %arg1: memref<16x128xbf16, #tpu.memory_space<vmem>>, %arg2: memref<16x128xf32, #tpu.memory_space<vmem>>, %arg3: memref<128x128xbf16, #tpu.memory_space<vmem>>, %arg4: memref<3x128xf32, #tpu.memory_space<vmem>>, %arg5: memref<16x128xf32, #tpu.memory_space<vmem>>) attributes {dimension_semantics = [#tpu.dimension_semantics<parallel>], iteration_bounds = array<i64: 1>, scalar_prefetch = 0 : i64, scratch_operands = 0 : i64, tpu.core_type = #tpu.core_type<tc>, window_params = [{transform_indices = @transform_0, window_bounds = array<i64: 16, 128>}, {transform_indices = @transform_1, window_bounds = array<i64: 16, 128>}, {pipeline_mode = #tpu.pipeline_mode<synchronous>, transform_indices = @transform_2, window_bounds = array<i64: 128, 128>}, {pipeline_mode = #tpu.pipeline_mode<synchronous>, transform_indices = @transform_3, window_bounds = array<i64: 3, 128>}, {transform_indices = @transform_4, window_bounds = array<i64: 16, 128>}]} {
    %c0 = arith.constant 0 : index
    %c0_0 = arith.constant 0 : index
    %0 = vector.load %arg1[%c0, %c0_0] : memref<16x128xbf16, #tpu.memory_space<vmem>>, vector<16x128xbf16>
    %c0_1 = arith.constant 0 : index
    %c0_2 = arith.constant 0 : index
    %1 = vector.load %arg3[%c0_1, %c0_2] : memref<128x128xbf16, #tpu.memory_space<vmem>>, vector<128x128xbf16>
    %cst = arith.constant dense<0.000000e+00> : vector<16x128xf32>
    %2 = tpu.matmul %0, %1, %cst {dimension_numbers = #tpu.dot_dimension_numbers<[1], [0], [0], [1], [0, 0, 1, 1], [], []>} : vector<16x128xbf16>, vector<128x128xbf16>, vector<16x128xf32> -> vector<16x128xf32>
    %c0_3 = arith.constant 0 : index
    %c0_4 = arith.constant 0 : index
    %3 = vector.load %arg4[%c0_3, %c0_4] : memref<3x128xf32, #tpu.memory_space<vmem>>, vector<3x128xf32>
    %4 = vector.extract_strided_slice %3 {offsets = [0, 0], sizes = [1, 128], strides = [1, 1]} : vector<3x128xf32> to vector<1x128xf32>
    %5 = vector.extract_strided_slice %3 {offsets = [1, 0], sizes = [1, 128], strides = [1, 1]} : vector<3x128xf32> to vector<1x128xf32>
    %6 = vector.extract_strided_slice %3 {offsets = [2, 0], sizes = [1, 128], strides = [1, 1]} : vector<3x128xf32> to vector<1x128xf32>
    %7 = vector.broadcast %4 : vector<1x128xf32> to vector<16x128xf32>
    %8 = arith.addf %2, %7 : vector<16x128xf32>
    %c0_5 = arith.constant 0 : index
    %c0_6 = arith.constant 0 : index
    %9 = vector.load %arg2[%c0_5, %c0_6] : memref<16x128xf32, #tpu.memory_space<vmem>>, vector<16x128xf32>
    %10 = arith.addf %8, %9 : vector<16x128xf32>
    %cst_7 = arith.constant dense<0.000000e+00> : vector<16xf32>
    %11 = vector.multi_reduction <add>, %10, %cst_7 [1] : vector<16x128xf32> to vector<16xf32>
    %12 = vector.shape_cast %11 : vector<16xf32> to vector<16x1xf32>
    %cst_8 = arith.constant 3.125000e-02 : f32
    %13 = vector.broadcast %cst_8 : f32 to vector<16x1xf32>
    %14 = arith.mulf %12, %13 : vector<16x1xf32>
    %15 = vector.broadcast %14 : vector<16x1xf32> to vector<16x128xf32>
    %16 = arith.subf %10, %15 : vector<16x128xf32>
    %17 = arith.mulf %16, %16 : vector<16x128xf32>
    %cst_9 = arith.constant dense<0.000000e+00> : vector<16xf32>
    %18 = vector.multi_reduction <add>, %17, %cst_9 [1] : vector<16x128xf32> to vector<16xf32>
    %19 = vector.shape_cast %18 : vector<16xf32> to vector<16x1xf32>
    %20 = arith.mulf %14, %14 : vector<16x1xf32>
    %cst_10 = arith.constant 9.600000e+01 : f32
    %21 = vector.broadcast %cst_10 : f32 to vector<16x1xf32>
    %22 = arith.mulf %21, %20 : vector<16x1xf32>
    %23 = arith.subf %19, %22 : vector<16x1xf32>
    %cst_11 = arith.constant 3.125000e-02 : f32
    %24 = vector.broadcast %cst_11 : f32 to vector<16x1xf32>
    %25 = arith.mulf %23, %24 : vector<16x1xf32>
    %cst_12 = arith.constant 9.99999974E-6 : f32
    %26 = vector.broadcast %cst_12 : f32 to vector<16x1xf32>
    %27 = arith.addf %25, %26 : vector<16x1xf32>
    %28 = math.rsqrt %27 : vector<16x1xf32>
    %29 = vector.broadcast %28 : vector<16x1xf32> to vector<16x128xf32>
    %30 = arith.mulf %16, %29 : vector<16x128xf32>
    %31 = vector.broadcast %5 : vector<1x128xf32> to vector<16x128xf32>
    %32 = arith.mulf %30, %31 : vector<16x128xf32>
    %33 = vector.broadcast %6 : vector<1x128xf32> to vector<16x128xf32>
    %34 = arith.addf %32, %33 : vector<16x128xf32>
    %c0_13 = arith.constant 0 : index
    %c0_14 = arith.constant 0 : index
    %35 = vector.load %arg5[%c0_13, %c0_14] : memref<16x128xf32, #tpu.memory_space<vmem>>, vector<16x128xf32>
    tpu.vector_store %arg5[%c0_13, %c0_14], %34 {strides = array<i32>} : memref<16x128xf32, #tpu.memory_space<vmem>>, vector<16x128xf32>,
    return
  }
  func.func @transform_0(%arg0: i32) -> (i32, i32) {
    %c0_i32 = arith.constant 0 : i32
    %c0_i32_0 = arith.constant 0 : i32
    return %arg0, %c0_i32 : i32, i32
  }
  func.func @transform_1(%arg0: i32) -> (i32, i32) {
    %c0_i32 = arith.constant 0 : i32
    %c0_i32_0 = arith.constant 0 : i32
    return %arg0, %c0_i32 : i32, i32
  }
  func.func @transform_2(%arg0: i32) -> (i32, i32) {
    %c0_i32 = arith.constant 0 : i32
    %c0_i32_0 = arith.constant 0 : i32
    %c0_i32_1 = arith.constant 0 : i32
    return %c0_i32, %c0_i32_0 : i32, i32
  }
  func.func @transform_3(%arg0: i32) -> (i32, i32) {
    %c0_i32 = arith.constant 0 : i32
    %c0_i32_0 = arith.constant 0 : i32
    %c0_i32_1 = arith.constant 0 : i32
    return %c0_i32, %c0_i32_0 : i32, i32
  }
  func.func @transform_4(%arg0: i32) -> (i32, i32) {
    %c0_i32 = arith.constant 0 : i32
    %c0_i32_0 = arith.constant 0 : i32
    return %arg0, %c0_i32 : i32, i32
  }
}

module attributes {stable_mosaic.version = 11 : i64} {
  func.func @_kernel_resident(%arg0: i32, %arg1: memref<16x128xbf16, #tpu.memory_space<vmem>>, %arg2: memref<16x128xf32, #tpu.memory_space<vmem>>, %arg3: memref<128x128xbf16, #tpu.memory_space<vmem>>, %arg4: memref<3x128xf32, #tpu.memory_space<vmem>>, %arg5: memref<16x128xf32, #tpu.memory_space<vmem>>) attributes {dimension_semantics = [#tpu.dimension_semantics<parallel>], iteration_bounds = array<i64: 1>, scalar_prefetch = 0 : i64, scratch_operands = 0 : i64, tpu.core_type = #tpu.core_type<tc>, window_params = [{transform_indices = @transform_0, window_bounds = array<i64: 16, 128>}, {transform_indices = @transform_1, window_bounds = array<i64: 16, 128>}, {pipeline_mode = #tpu.pipeline_mode<synchronous>, transform_indices = @transform_2, window_bounds = array<i64: 128, 128>}, {pipeline_mode = #tpu.pipeline_mode<synchronous>, transform_indices = @transform_3, window_bounds = array<i64: 3, 128>}, {transform_indices = @transform_4, window_bounds = array<i64: 16, 128>}]} {
    %c0 = arith.constant 0 : index
    %c0_0 = arith.constant 0 : index
    %0 = vector.load %arg1[%c0, %c0_0] : memref<16x128xbf16, #tpu.memory_space<vmem>>, vector<16x128xbf16>
    %c0_1 = arith.constant 0 : index
    %c0_2 = arith.constant 0 : index
    %1 = vector.load %arg3[%c0_1, %c0_2] : memref<128x128xbf16, #tpu.memory_space<vmem>>, vector<128x128xbf16>
    %cst = arith.constant dense<0.000000e+00> : vector<16x128xf32>
    %2 = tpu.matmul %0, %1, %cst {dimension_numbers = #tpu.dot_dimension_numbers<[1], [0], [0], [1], [0, 0, 1, 1], [], []>} : vector<16x128xbf16>, vector<128x128xbf16>, vector<16x128xf32> -> vector<16x128xf32>
    %c0_3 = arith.constant 0 : index
    %c0_4 = arith.constant 0 : index
    %3 = vector.load %arg4[%c0_3, %c0_4] : memref<3x128xf32, #tpu.memory_space<vmem>>, vector<3x128xf32>
    %4 = vector.extract_strided_slice %3 {offsets = [0, 0], sizes = [1, 128], strides = [1, 1]} : vector<3x128xf32> to vector<1x128xf32>
    %5 = vector.extract_strided_slice %3 {offsets = [1, 0], sizes = [1, 128], strides = [1, 1]} : vector<3x128xf32> to vector<1x128xf32>
    %6 = vector.extract_strided_slice %3 {offsets = [2, 0], sizes = [1, 128], strides = [1, 1]} : vector<3x128xf32> to vector<1x128xf32>
    %7 = vector.broadcast %4 : vector<1x128xf32> to vector<16x128xf32>
    %8 = arith.addf %2, %7 : vector<16x128xf32>
    %c0_5 = arith.constant 0 : index
    %c0_6 = arith.constant 0 : index
    %9 = vector.load %arg2[%c0_5, %c0_6] : memref<16x128xf32, #tpu.memory_space<vmem>>, vector<16x128xf32>
    %10 = arith.addf %8, %9 : vector<16x128xf32>
    %cst_7 = arith.constant dense<0.000000e+00> : vector<16xf32>
    %11 = vector.multi_reduction <add>, %10, %cst_7 [1] : vector<16x128xf32> to vector<16xf32>
    %12 = vector.shape_cast %11 : vector<16xf32> to vector<16x1xf32>
    %cst_8 = arith.constant 3.125000e-02 : f32
    %13 = vector.broadcast %cst_8 : f32 to vector<16x1xf32>
    %14 = arith.mulf %12, %13 : vector<16x1xf32>
    %15 = vector.broadcast %14 : vector<16x1xf32> to vector<16x128xf32>
    %16 = arith.subf %10, %15 : vector<16x128xf32>
    %17 = arith.mulf %16, %16 : vector<16x128xf32>
    %cst_9 = arith.constant dense<0.000000e+00> : vector<16xf32>
    %18 = vector.multi_reduction <add>, %17, %cst_9 [1] : vector<16x128xf32> to vector<16xf32>
    %19 = vector.shape_cast %18 : vector<16xf32> to vector<16x1xf32>
    %20 = arith.mulf %14, %14 : vector<16x1xf32>
    %cst_10 = arith.constant 9.600000e+01 : f32
    %21 = vector.broadcast %cst_10 : f32 to vector<16x1xf32>
    %22 = arith.mulf %21, %20 : vector<16x1xf32>
    %23 = arith.subf %19, %22 : vector<16x1xf32>
    %cst_11 = arith.constant 3.125000e-02 : f32
    %24 = vector.broadcast %cst_11 : f32 to vector<16x1xf32>
    %25 = arith.mulf %23, %24 : vector<16x1xf32>
    %cst_12 = arith.constant 9.99999974E-6 : f32
    %26 = vector.broadcast %cst_12 : f32 to vector<16x1xf32>
    %27 = arith.addf %25, %26 : vector<16x1xf32>
    %28 = math.rsqrt %27 : vector<16x1xf32>
    %29 = vector.broadcast %28 : vector<16x1xf32> to vector<16x128xf32>
    %30 = arith.mulf %16, %29 : vector<16x128xf32>
    %31 = vector.broadcast %5 : vector<1x128xf32> to vector<16x128xf32>
    %32 = arith.mulf %30, %31 : vector<16x128xf32>
    %33 = vector.broadcast %6 : vector<1x128xf32> to vector<16x128xf32>
    %34 = arith.addf %32, %33 : vector<16x128xf32>
    %c0_13 = arith.constant 0 : index
    %c0_14 = arith.constant 0 : index
    %35 = vector.load %arg5[%c0_13, %c0_14] : memref<16x128xf32, #tpu.memory_space<vmem>>, vector<16x128xf32>
    tpu.vector_store %arg5[%c0_13, %c0_14], %34 {strides = array<i32>} : memref<16x128xf32, #tpu.memory_space<vmem>>, vector<16x128xf32>,
    return
  }
  func.func @transform_0(%arg0: i32) -> (i32, i32) {
    %c0_i32 = arith.constant 0 : i32
    %c0_i32_0 = arith.constant 0 : i32
    return %arg0, %c0_i32 : i32, i32
  }
  func.func @transform_1(%arg0: i32) -> (i32, i32) {
    %c0_i32 = arith.constant 0 : i32
    %c0_i32_0 = arith.constant 0 : i32
    return %arg0, %c0_i32 : i32, i32
  }
  func.func @transform_2(%arg0: i32) -> (i32, i32) {
    %c0_i32 = arith.constant 0 : i32
    %c0_i32_0 = arith.constant 0 : i32
    %c0_i32_1 = arith.constant 0 : i32
    return %c0_i32, %c0_i32_0 : i32, i32
  }
  func.func @transform_3(%arg0: i32) -> (i32, i32) {
    %c0_i32 = arith.constant 0 : i32
    %c0_i32_0 = arith.constant 0 : i32
    %c0_i32_1 = arith.constant 0 : i32
    return %c0_i32, %c0_i32_0 : i32, i32
  }
  func.func @transform_4(%arg0: i32) -> (i32, i32) {
    %c0_i32 = arith.constant 0 : i32
    %c0_i32_0 = arith.constant 0 : i32
    return %arg0, %c0_i32 : i32, i32
  }
}

</mosaic_0001>

<bundles_post_ra>
// kernel: tpu_custom_call.1
= control target key start
LH: loop header
LB: loop body
LE: loop exit
PB: predicated region body
PF: predicated region fallthrough
CT: control target
= control target key end

     0   :  { %9 = vsyncpa [#allocation3], 0  ;;  %s492_s0 = inlined_call_operand.hbm [shape: bf16[16,128], index: 0, kind: input, shape index: {}]   ;;  %s493_s1 = inlined_call_operand.hbm [shape: f32[16,128], index: 1, kind: input, shape index: {}]   ;;  %s494_s2 = inlined_call_operand.hbm [shape: bf16[128,128], index: 2, kind: input, shape index: {}]   ;;  %s495_s3 = inlined_call_operand.hbm [shape: f32[3,128], index: 3, kind: input, shape index: {}]   ;;  %s496_s4 = inlined_call_operand.hbm [shape: f32[16,128], index: 4, kind: output, shape index: {}]  }
   0x1   :  { %10 = vsyncpa [#allocation6], 0 }
   0x2   :  { %11 = vsyncpa [#allocation9], 0  ;;  %s30_s17 = sshll.u32 %s493_s1, 4  ;;  %s31_s17 = int_to_ptr.hbm [resolvable:$true] %s30_s17 }
   0x3   :  { %12 = vsyncpa [#allocation4], 0  ;;  %s432_s18 = smov [#allocation5]   ;;  %s17_s22 = sshll.u32 %s492_s0, 4  ;;  %s18_s22 = int_to_ptr.hbm [resolvable:$true] %s17_s22 }
   0x4   :  { %s32_s19 = sshll.u32 %s432_s18, 4  ;;  %s433_s23 = smov 128   ;;  %s33_s19 = int_to_ptr.vmem [resolvable:$true] %s32_s19 }
   0x5   :  { %s434_s24 = smov 8   ;;  %s435_s25 = smov [#allocation2]  }
   0x6   :  { %38 = dma.hbm_to_vmem [thread:$0]  %s31_s17, 256, %s33_s19, [#allocation6], %s433_s23, %s433_s23, %s434_s24  }
   0x7   :  { %s19_s26 = sshll.u32 %s435_s25, 4  ;;  %s436_s1 = smov 64   ;;  %s20_s26 = int_to_ptr.vmem [resolvable:$true] %s19_s26 }
   0x8   :  { %s437_s27 = smov 4   ;;  %s43_s30 = sshll.u32 %s494_s2, 4  ;;  %s44_s30 = int_to_ptr.hbm [resolvable:$true] %s43_s30 }
   0x9   :  { %25 = dma.hbm_to_vmem [thread:$0]  %s18_s22, 128, %s20_s26, [#allocation3], %s436_s1, %s436_s1, %s437_s27  }
   0xa   :  { %s438_s5 = smov [#allocation7]   ;;  %s57_s8 = sshll.u32 %s495_s3, 4  ;;  %s58_s8 = int_to_ptr.hbm [resolvable:$true] %s57_s8 }
   0xb   :  { %s45_s0 = sshll.u32 %s438_s5, 4  ;;  %s439_s9 = smov [#allocation8]   ;;  %s46_s0 = int_to_ptr.vmem [resolvable:$true] %s45_s0 }
   0xc   :  { %51 = dma.hbm_to_vmem [thread:$0]  %s44_s30, 1024, %s46_s0, [#allocation6], %s436_s1, %s436_s1, %s437_s27  }
   0xd   :  { %s59_s10 = sshll.u32 %s439_s9, 4  ;;  %s60_s10 = int_to_ptr.vmem [resolvable:$true] %s59_s10 }
   0xe   :  { %62 = dma.hbm_to_vmem [thread:$0]  %s58_s8, 64, %s60_s10, [#allocation9]  }
   0xf   :  { %424 = dma.done.wait [#allocation3], 128  }
  0x10   :  { %425 = vsyncadd [#allocation3], 4294967168 }
  0x11   :  { %426 = dma.done.wait [#allocation6], 1280  }
  0x12   :  { %427 = vsyncadd [#allocation6], 4294966016 }
  0x13   :  { %428 = dma.done.wait [#allocation9], 64  }
  0x14   :  { %429 = vsyncadd [#allocation9], 4294967232  ;;  %v290_v0 = vld [vmem:[#allocation7 + $0x38] sm:$0xff]  ;;  %v289_v1 = vld [vmem:[#allocation7 + $0x30] sm:$0xff]  ;;  %s440_s2 = smov [#allocation10]   ;;  %s231_s13 = sshll.u32 %s496_s4, 4  ;;  %s232_s13 = int_to_ptr.hbm [resolvable:$true] %s231_s13 }
  0x15   :  { %153 = vmatpush.bf16.msra.mxu0 %v290_v0  ;;  %v288_v2 = vld [vmem:[#allocation7 + $0x28] sm:$0xff]  ;;  %v287_v3 = vld [vmem:[#allocation7 + $0x20] sm:$0xff]  ;;  %v286_v4 = vld [vmem:[#allocation7 + $0x18] sm:$0xff]  ;;  %s229_s3 = sshll.u32 %s440_s2, 4  ;;  %s230_s3 = int_to_ptr.vmem [resolvable:$true] %s229_s3 }
  0x16   :  { %v285_v5 = vld [vmem:[#allocation7 + $0x10] sm:$0xff]  ;;  %v284_v6 = vld [vmem:[#allocation7 + $0x8] sm:$0xff]  ;;  %v283_v7 = vld [vmem:[#allocation7] sm:$0xff] }
  0x17   :  { %v282_v8 = vld [vmem:[#allocation2] sm:$0xff]  ;;  %v481_v9 = vld [vmem:[#allocation8] sm:$0x7]  ;;  %v167_v12 = vld [vmem:[#allocation5] sm:$0xff] }
  0x18   :  { %v98_v10 = vperm.slane %v481_v9, 0  ;;  %v168_v16 = vld [vmem:[#allocation5 + $0x8] sm:$0xff]  ;;  %v217_v47 = vperm.slane %v481_v9, 1  ;;  %v220_v50 = vperm.slane %v481_v9, 2 }
  0x19   :  { %154 = vmatpush.bf16.msra.mxu0 %v289_v1 }
  0x1d   :  { %155 = vmatpush.bf16.msra.mxu0 %v288_v2 }
  0x21   :  { %156 = vmatpush.bf16.msra.mxu0 %v287_v3 }
  0x25   :  { %157 = vmatpush.bf16.msra.mxu0 %v286_v4 }
  0x29   :  { %158 = vmatpush.bf16.msra.mxu0 %v285_v5 }
  0x2d   :  { %159 = vmatpush.bf16.msra.mxu0 %v284_v6 }
  0x31   :  { %160 = vmatpush.bf16.msra.mxu0 %v283_v7 }
  0x34   :  { %161 = vmatmul.bf16.vlgmr.msra.gmra.mxu0 %v282_v8 }
  0xb1   :  { %v162_v11 = vpop.f32.mrf.mxu0 }
  0xb2   :  { %v163_v13 = vadd.f32 %v162_v11, %v98_v10 }
  0xb4   :  { %v169_v14 = vadd.f32 %v167_v12, %v163_v13 }
  0xb6   :  { %171 = vadd.xlane.f32.xlu0 %v169_v14 }
  0xb9   :  { %v164_v15 = vpop.f32.mrf.mxu0 }
  0xba   :  { %v165_v17 = vadd.f32 %v164_v15, %v98_v10 }
  0xbc   :  { %v170_v18 = vadd.f32 %v168_v16, %v165_v17 }
  0xbe   :  { %173 = vadd.xlane.f32.xlu0 %v170_v18 }
 0x129   :  { %v172_v19 = vpop.xlane.xlu0 %171 }
 0x12a   :  { %v175_v20 = vmul.f32 0.03125, %v172_v19 }
 0x12c   :  { %v177_v21 = vsub.f32 %v169_v14, %v175_v20  ;;  %v185_v27 = vmul.f32 %v175_v20, %v175_v20 }
 0x12e   :  { %v179_v22 = vmul.f32 %v177_v21, %v177_v21  ;;  %v187_v28 = vmul.f32 96.0, %v185_v27 }
 0x130   :  { %181 = vadd.xlane.f32.xlu1 %v179_v22 }
 0x131   :  { %v174_v23 = vpop.xlane.xlu0 %173 }
 0x132   :  { %v176_v24 = vmul.f32 0.03125, %v174_v23 }
 0x134   :  { %v178_v25 = vsub.f32 %v170_v18, %v176_v24  ;;  %v186_v31 = vmul.f32 %v176_v24, %v176_v24 }
 0x136   :  { %v180_v26 = vmul.f32 %v178_v25, %v178_v25  ;;  %v188_v34 = vmul.f32 96.0, %v186_v31 }
 0x138   :  { %183 = vadd.xlane.f32.xlu1 %v180_v26 }
 0x1a3   :  { %v182_v29 = vpop.xlane.xlu1 %181 }
 0x1a4   :  { %v189_v30 = vsub.f32 %v182_v29, %v187_v28 }
 0x1a6   :  { %v191_v32 = vmul.f32 0.03125, %v189_v30 }
 0x1a8   :  { %v193_v33 = vadd.f32 1e-05, %v191_v32 }
 0x1aa   :  { %300 = vrsqrt.f32 %v193_v33  ;;  %vm201_vm1 = vweird.f32 %v193_v33 }
 0x1ab   :  { %v184_v35 = vpop.xlane.xlu1 %183 }
 0x1ac   :  { %v190_v36 = vsub.f32 %v184_v35, %v188_v34 }
 0x1ae   :  { %v192_v37 = vmul.f32 0.03125, %v190_v36 }
 0x1b0   :  { %v301_v38 = vpop.eup %300  ;;  %v194_v39 = vadd.f32 1e-05, %v192_v37 }
 0x1b1   :  { %v196_v40 = vmul.f32 %v301_v38, %v193_v33  ;;  %vm202_vm0 = vweird.f32 %v301_v38 }
 0x1b2   :  { %302 = vrsqrt.f32 %v194_v39  ;;  %vm203_vm2 = vmor %vm201_vm1, %vm202_vm0  ;;  %vm211_vm4 = vweird.f32 %v194_v39 }
 0x1b3   :  { %v197_v41 = vmul.f32 %v301_v38, %v196_v40 }
 0x1b5   :  { %v198_v42 = vmul.f32 0.5, %v197_v41 }
 0x1b7   :  { %v199_v43 = vsub.f32 1.5, %v198_v42 }
 0x1b8   :  { %v303_v44 = vpop.eup %302 }
 0x1b9   :  { %v200_v45 = vmul.f32 %v301_v38, %v199_v43  ;;  %v206_v46 = vmul.f32 %v303_v44, %v194_v39  ;;  %vm212_vm3 = vweird.f32 %v303_v44 }
 0x1ba   :  { %vm213_vm5 = vmor %vm211_vm4, %vm212_vm3 }
 0x1bb   :  { %v204_v48 = vsel %vm203_vm2, %v301_v38, %v200_v45  ;;  %v207_v49 = vmul.f32 %v303_v44, %v206_v46 }
 0x1bc   :  { %v215_v51 = vmul.f32 %v204_v48, %v177_v21 }
 0x1bd   :  { %v208_v52 = vmul.f32 0.5, %v207_v49 }
 0x1be   :  { %v218_v53 = vmul.f32 %v217_v47, %v215_v51 }
 0x1bf   :  { %v209_v54 = vsub.f32 1.5, %v208_v52 }
 0x1c0   :  { %v221_v55 = vadd.f32 %v220_v50, %v218_v53 }
 0x1c1   :  { %v210_v56 = vmul.f32 %v303_v44, %v209_v54 }
 0x1c2   :  { %223 = vst [vmem:[#allocation10] sm:$0xff] %v221_v55 }
 0x1c3   :  { %v214_v57 = vsel %vm213_vm5, %v303_v44, %v210_v56 }
 0x1c4   :  { %v216_v58 = vmul.f32 %v214_v57, %v178_v25 }
 0x1c6   :  { %v219_v59 = vmul.f32 %v217_v47, %v216_v58 }
 0x1c8   :  { %v222_v60 = vadd.f32 %v220_v50, %v219_v59 }
 0x1ca   :  { %224 = vst [vmem:[#allocation10 + $0x8] sm:$0xff] %v222_v60 }
 0x1cb   :  { %237 = dma.vmem_to_hbm [thread:$0]  %s230_s3, 256, %s232_s13, [#allocation4], %s433_s23, %s433_s23, %s434_s24  }
 0x1cc   :  { %430 = dma.done.wait [#allocation4], 256  }
 0x1cd   :  { %431 = vsyncadd [#allocation4], 4294967040 }
 0x1ce   :  { %242 = vsyncpa [#allocation3], 1 }
 0x1cf   :  { %243 = vsyncpa [#allocation6], 1 }
 0x1d0   :  { %244 = vsyncpa [#allocation9], 1 }
 0x1d1   :  { %245 = vsyncpa [#allocation4], 1 }

// kernel: tpu_custom_call.1
= control target key start
LH: loop header
LB: loop body
LE: loop exit
PB: predicated region body
PF: predicated region fallthrough
CT: control target
= control target key end

     0   :  { %9 = vsyncpa [#allocation3], 0  ;;  %s492_s0 = inlined_call_operand.hbm [shape: bf16[16,128], index: 0, kind: input, shape index: {}]   ;;  %s493_s1 = inlined_call_operand.hbm [shape: f32[16,128], index: 1, kind: input, shape index: {}]   ;;  %s494_s2 = inlined_call_operand.hbm [shape: bf16[128,128], index: 2, kind: input, shape index: {}]   ;;  %s495_s3 = inlined_call_operand.hbm [shape: f32[3,128], index: 3, kind: input, shape index: {}]   ;;  %s496_s4 = inlined_call_operand.hbm [shape: f32[16,128], index: 4, kind: output, shape index: {}]  }
   0x1   :  { %10 = vsyncpa [#allocation6], 0 }
   0x2   :  { %11 = vsyncpa [#allocation9], 0  ;;  %s30_s17 = sshll.u32 %s493_s1, 4  ;;  %s31_s17 = int_to_ptr.hbm [resolvable:$true] %s30_s17 }
   0x3   :  { %12 = vsyncpa [#allocation4], 0  ;;  %s432_s18 = smov [#allocation5]   ;;  %s17_s22 = sshll.u32 %s492_s0, 4  ;;  %s18_s22 = int_to_ptr.hbm [resolvable:$true] %s17_s22 }
   0x4   :  { %s32_s19 = sshll.u32 %s432_s18, 4  ;;  %s433_s23 = smov 128   ;;  %s33_s19 = int_to_ptr.vmem [resolvable:$true] %s32_s19 }
   0x5   :  { %s434_s24 = smov 8   ;;  %s435_s25 = smov [#allocation2]  }
   0x6   :  { %38 = dma.hbm_to_vmem [thread:$0]  %s31_s17, 256, %s33_s19, [#allocation6], %s433_s23, %s433_s23, %s434_s24  }
   0x7   :  { %s19_s26 = sshll.u32 %s435_s25, 4  ;;  %s436_s1 = smov 64   ;;  %s20_s26 = int_to_ptr.vmem [resolvable:$true] %s19_s26 }
   0x8   :  { %s437_s27 = smov 4   ;;  %s43_s30 = sshll.u32 %s494_s2, 4  ;;  %s44_s30 = int_to_ptr.hbm [resolvable:$true] %s43_s30 }
   0x9   :  { %25 = dma.hbm_to_vmem [thread:$0]  %s18_s22, 128, %s20_s26, [#allocation3], %s436_s1, %s436_s1, %s437_s27  }
   0xa   :  { %s438_s5 = smov [#allocation7]   ;;  %s57_s8 = sshll.u32 %s495_s3, 4  ;;  %s58_s8 = int_to_ptr.hbm [resolvable:$true] %s57_s8 }
   0xb   :  { %s45_s0 = sshll.u32 %s438_s5, 4  ;;  %s439_s9 = smov [#allocation8]   ;;  %s46_s0 = int_to_ptr.vmem [resolvable:$true] %s45_s0 }
   0xc   :  { %51 = dma.hbm_to_vmem [thread:$0]  %s44_s30, 1024, %s46_s0, [#allocation6], %s436_s1, %s436_s1, %s437_s27  }
   0xd   :  { %s59_s10 = sshll.u32 %s439_s9, 4  ;;  %s60_s10 = int_to_ptr.vmem [resolvable:$true] %s59_s10 }
   0xe   :  { %62 = dma.hbm_to_vmem [thread:$0]  %s58_s8, 64, %s60_s10, [#allocation9]  }
   0xf   :  { %424 = dma.done.wait [#allocation3], 128  }
  0x10   :  { %425 = vsyncadd [#allocation3], 4294967168 }
  0x11   :  { %426 = dma.done.wait [#allocation6], 1280  }
  0x12   :  { %427 = vsyncadd [#allocation6], 4294966016 }
  0x13   :  { %428 = dma.done.wait [#allocation9], 64  }
  0x14   :  { %429 = vsyncadd [#allocation9], 4294967232  ;;  %v290_v0 = vld [vmem:[#allocation7 + $0x38] sm:$0xff]  ;;  %v289_v1 = vld [vmem:[#allocation7 + $0x30] sm:$0xff]  ;;  %s440_s2 = smov [#allocation10]   ;;  %s231_s13 = sshll.u32 %s496_s4, 4  ;;  %s232_s13 = int_to_ptr.hbm [resolvable:$true] %s231_s13 }
  0x15   :  { %153 = vmatpush.bf16.msra.mxu0 %v290_v0  ;;  %v288_v2 = vld [vmem:[#allocation7 + $0x28] sm:$0xff]  ;;  %v287_v3 = vld [vmem:[#allocation7 + $0x20] sm:$0xff]  ;;  %v286_v4 = vld [vmem:[#allocation7 + $0x18] sm:$0xff]  ;;  %s229_s3 = sshll.u32 %s440_s2, 4  ;;  %s230_s3 = int_to_ptr.vmem [resolvable:$true] %s229_s3 }
  0x16   :  { %v285_v5 = vld [vmem:[#allocation7 + $0x10] sm:$0xff]  ;;  %v284_v6 = vld [vmem:[#allocation7 + $0x8] sm:$0xff]  ;;  %v283_v7 = vld [vmem:[#allocation7] sm:$0xff] }
  0x17   :  { %v282_v8 = vld [vmem:[#allocation2] sm:$0xff]  ;;  %v481_v9 = vld [vmem:[#allocation8] sm:$0x7]  ;;  %v167_v12 = vld [vmem:[#allocation5] sm:$0xff] }
  0x18   :  { %v98_v10 = vperm.slane %v481_v9, 0  ;;  %v168_v16 = vld [vmem:[#allocation5 + $0x8] sm:$0xff]  ;;  %v217_v47 = vperm.slane %v481_v9, 1  ;;  %v220_v50 = vperm.slane %v481_v9, 2 }
  0x19   :  { %154 = vmatpush.bf16.msra.mxu0 %v289_v1 }
  0x1d   :  { %155 = vmatpush.bf16.msra.mxu0 %v288_v2 }
  0x21   :  { %156 = vmatpush.bf16.msra.mxu0 %v287_v3 }
  0x25   :  { %157 = vmatpush.bf16.msra.mxu0 %v286_v4 }
  0x29   :  { %158 = vmatpush.bf16.msra.mxu0 %v285_v5 }
  0x2d   :  { %159 = vmatpush.bf16.msra.mxu0 %v284_v6 }
  0x31   :  { %160 = vmatpush.bf16.msra.mxu0 %v283_v7 }
  0x34   :  { %161 = vmatmul.bf16.vlgmr.msra.gmra.mxu0 %v282_v8 }
  0xb1   :  { %v162_v11 = vpop.f32.mrf.mxu0 }
  0xb2   :  { %v163_v13 = vadd.f32 %v162_v11, %v98_v10 }
  0xb4   :  { %v169_v14 = vadd.f32 %v167_v12, %v163_v13 }
  0xb6   :  { %171 = vadd.xlane.f32.xlu0 %v169_v14 }
  0xb9   :  { %v164_v15 = vpop.f32.mrf.mxu0 }
  0xba   :  { %v165_v17 = vadd.f32 %v164_v15, %v98_v10 }
  0xbc   :  { %v170_v18 = vadd.f32 %v168_v16, %v165_v17 }
  0xbe   :  { %173 = vadd.xlane.f32.xlu0 %v170_v18 }
 0x129   :  { %v172_v19 = vpop.xlane.xlu0 %171 }
 0x12a   :  { %v175_v20 = vmul.f32 0.03125, %v172_v19 }
 0x12c   :  { %v177_v21 = vsub.f32 %v169_v14, %v175_v20  ;;  %v185_v27 = vmul.f32 %v175_v20, %v175_v20 }
 0x12e   :  { %v179_v22 = vmul.f32 %v177_v21, %v177_v21  ;;  %v187_v28 = vmul.f32 96.0, %v185_v27 }
 0x130   :  { %181 = vadd.xlane.f32.xlu1 %v179_v22 }
 0x131   :  { %v174_v23 = vpop.xlane.xlu0 %173 }
 0x132   :  { %v176_v24 = vmul.f32 0.03125, %v174_v23 }
 0x134   :  { %v178_v25 = vsub.f32 %v170_v18, %v176_v24  ;;  %v186_v31 = vmul.f32 %v176_v24, %v176_v24 }
 0x136   :  { %v180_v26 = vmul.f32 %v178_v25, %v178_v25  ;;  %v188_v34 = vmul.f32 96.0, %v186_v31 }
 0x138   :  { %183 = vadd.xlane.f32.xlu1 %v180_v26 }
 0x1a3   :  { %v182_v29 = vpop.xlane.xlu1 %181 }
 0x1a4   :  { %v189_v30 = vsub.f32 %v182_v29, %v187_v28 }
 0x1a6   :  { %v191_v32 = vmul.f32 0.03125, %v189_v30 }
 0x1a8   :  { %v193_v33 = vadd.f32 1e-05, %v191_v32 }
 0x1aa   :  { %300 = vrsqrt.f32 %v193_v33  ;;  %vm201_vm1 = vweird.f32 %v193_v33 }
 0x1ab   :  { %v184_v35 = vpop.xlane.xlu1 %183 }
 0x1ac   :  { %v190_v36 = vsub.f32 %v184_v35, %v188_v34 }
 0x1ae   :  { %v192_v37 = vmul.f32 0.03125, %v190_v36 }
 0x1b0   :  { %v301_v38 = vpop.eup %300  ;;  %v194_v39 = vadd.f32 1e-05, %v192_v37 }
 0x1b1   :  { %v196_v40 = vmul.f32 %v301_v38, %v193_v33  ;;  %vm202_vm0 = vweird.f32 %v301_v38 }
 0x1b2   :  { %302 = vrsqrt.f32 %v194_v39  ;;  %vm203_vm2 = vmor %vm201_vm1, %vm202_vm0  ;;  %vm211_vm4 = vweird.f32 %v194_v39 }
 0x1b3   :  { %v197_v41 = vmul.f32 %v301_v38, %v196_v40 }
 0x1b5   :  { %v198_v42 = vmul.f32 0.5, %v197_v41 }
 0x1b7   :  { %v199_v43 = vsub.f32 1.5, %v198_v42 }
 0x1b8   :  { %v303_v44 = vpop.eup %302 }
 0x1b9   :  { %v200_v45 = vmul.f32 %v301_v38, %v199_v43  ;;  %v206_v46 = vmul.f32 %v303_v44, %v194_v39  ;;  %vm212_vm3 = vweird.f32 %v303_v44 }
 0x1ba   :  { %vm213_vm5 = vmor %vm211_vm4, %vm212_vm3 }
 0x1bb   :  { %v204_v48 = vsel %vm203_vm2, %v301_v38, %v200_v45  ;;  %v207_v49 = vmul.f32 %v303_v44, %v206_v46 }
 0x1bc   :  { %v215_v51 = vmul.f32 %v204_v48, %v177_v21 }
 0x1bd   :  { %v208_v52 = vmul.f32 0.5, %v207_v49 }
 0x1be   :  { %v218_v53 = vmul.f32 %v217_v47, %v215_v51 }
 0x1bf   :  { %v209_v54 = vsub.f32 1.5, %v208_v52 }
 0x1c0   :  { %v221_v55 = vadd.f32 %v220_v50, %v218_v53 }
 0x1c1   :  { %v210_v56 = vmul.f32 %v303_v44, %v209_v54 }
 0x1c2   :  { %223 = vst [vmem:[#allocation10] sm:$0xff] %v221_v55 }
 0x1c3   :  { %v214_v57 = vsel %vm213_vm5, %v303_v44, %v210_v56 }
 0x1c4   :  { %v216_v58 = vmul.f32 %v214_v57, %v178_v25 }
 0x1c6   :  { %v219_v59 = vmul.f32 %v217_v47, %v216_v58 }
 0x1c8   :  { %v222_v60 = vadd.f32 %v220_v50, %v219_v59 }
 0x1ca   :  { %224 = vst [vmem:[#allocation10 + $0x8] sm:$0xff] %v222_v60 }
 0x1cb   :  { %237 = dma.vmem_to_hbm [thread:$0]  %s230_s3, 256, %s232_s13, [#allocation4], %s433_s23, %s433_s23, %s434_s24  }
 0x1cc   :  { %430 = dma.done.wait [#allocation4], 256  }
 0x1cd   :  { %431 = vsyncadd [#allocation4], 4294967040 }
 0x1ce   :  { %242 = vsyncpa [#allocation3], 1 }
 0x1cf   :  { %243 = vsyncpa [#allocation6], 1 }
 0x1d0   :  { %244 = vsyncpa [#allocation9], 1 }
 0x1d1   :  { %245 = vsyncpa [#allocation4], 1 }

</bundles_post_ra>
